<compile_context>
chip_gen: v6e
topology: v6e:2x2x1
jax: 0.10.0
libtpu: 0.0.40
codegen_flags: <defaults>
</compile_context>

<pallas_src>
import functools
import math

import jax
import jax.numpy as jnp
from jax.experimental import pallas as pl
from jax.experimental.pallas import tpu as pltpu

_LOG_2PI = math.log(2.0 * math.pi)
_MIX_W = (3.0 / 20.0, 3.0 / 4.0, 1.0 / 10.0)   # RecVAE CompositePrior mixture weights
_UNIF_LOGVAR = 10.0                            # RecVAE wide ("uniform-ish") Gaussian logvar
_LOG_W0 = math.log(_MIX_W[0])
_LOG_W1 = math.log(_MIX_W[1])
_LOG_W2 = math.log(_MIX_W[2])
_EXP_NEG_UNIF_LOGVAR = math.exp(-_UNIF_LOGVAR)
_NEG_PAD = -1.0e30                             # recon padding: exp() underflows to 0, *0 stays 0


def _round_up(n, m):
    return ((n + m - 1) // m) * m


def _pad2d(a, rows, cols, value=0.0):
    r, c = a.shape
    if r == rows and c == cols:
        return a
    return jnp.pad(a, ((0, rows - r), (0, cols - c)), constant_values=value)


def _recvae_kernel(use_x_norm, gamma_ref, recon_ref, x_ref, *rest):
    if use_x_norm:
        (z_ref, mu_ref, logvar_ref, post_mu_ref, post_logvar_ref,
         out_ref, m_sc, s_sc, rx_sc, sx_sc) = rest
        norm_ref = None
    else:
        (norm_ref, z_ref, mu_ref, logvar_ref, post_mu_ref, post_logvar_ref,
         out_ref, m_sc, s_sc, rx_sc, sx_sc) = rest

    j = pl.program_id(1)
    nj = pl.num_programs(1)

    # ---- init per-batch-tile accumulators on the first item tile ----
    @pl.when(j == 0)
    def _():
        m_sc[...] = jnp.full(m_sc.shape, -jnp.inf, dtype=m_sc.dtype)
        s_sc[...] = jnp.zeros(s_sc.shape, dtype=s_sc.dtype)
        rx_sc[...] = jnp.zeros(rx_sc.shape, dtype=rx_sc.dtype)
        sx_sc[...] = jnp.zeros(sx_sc.shape, dtype=sx_sc.dtype)

    recon = recon_ref[...].astype(jnp.float32)        # (TB, TN)
    x = x_ref[...].astype(jnp.float32)                # (TB, TN)

    # ---- online logsumexp over items + fused row reductions (one pass) ----
    m_prev = m_sc[...]
    tile_max = jnp.max(recon, axis=-1, keepdims=True)
    m_new = jnp.maximum(m_prev, tile_max)
    alpha = jnp.exp(m_prev - m_new)                   # exp(-inf) = 0 on the first tile
    s_sc[...] = s_sc[...] * alpha + jnp.sum(jnp.exp(recon - m_new), axis=-1, keepdims=True)
    m_sc[...] = m_new
    rx_sc[...] = rx_sc[...] + jnp.sum(recon * x, axis=-1, keepdims=True)
    sx_sc[...] = sx_sc[...] + jnp.sum(x, axis=-1, keepdims=True)

    # ---- finalize on the last item tile ----
    @pl.when(j == nj - 1)
    def _():
        lse = m_sc[...] + jnp.log(s_sc[...])                          # (TB, 1)
        sum_x = sx_sc[...]
        # folded log-softmax:  sum_i log_softmax(recon)_i * x_i
        mll_row = rx_sc[...] - lse * sum_x                            # (TB, 1)

        norm = sum_x if use_x_norm else norm_ref[...].astype(jnp.float32)
        kl_weight = gamma_ref[0, 0] * norm                            # (TB, 1)

        z = z_ref[...].astype(jnp.float32)
        mu = mu_ref[...].astype(jnp.float32)
        logvar = logvar_ref[...].astype(jnp.float32)
        post_mu = post_mu_ref[...].astype(jnp.float32)
        post_logvar = post_logvar_ref[...].astype(jnp.float32)

        # log q(z | x)  (multiply by exp(-logvar) instead of dividing)
        log_q = -0.5 * (logvar + _LOG_2PI + (z - mu) ** 2 * jnp.exp(-logvar))

        # composite prior: stabilized logsumexp over 3 weighted Gaussians
        zsq = z * z
        g0 = -0.5 * (_LOG_2PI + zsq) + _LOG_W0
        g1 = -0.5 * (post_logvar + _LOG_2PI
                     + (z - post_mu) ** 2 * jnp.exp(-post_logvar)) + _LOG_W1
        g2 = -0.5 * (_UNIF_LOGVAR + _LOG_2PI + zsq * _EXP_NEG_UNIF_LOGVAR) + _LOG_W2
        gmax = jnp.maximum(jnp.maximum(g0, g1), g2)
        log_prior = gmax + jnp.log(jnp.exp(g0 - gmax) + jnp.exp(g1 - gmax)
                                   + jnp.exp(g2 - gmax))

        kld_row = kl_weight * jnp.sum(log_q - log_prior, axis=-1, keepdims=True)

        per_row = mll_row - kld_row                                   # (TB, 1)
        # lane-dense full-width store; wrapper reads lane 0
        out_ref[...] = jnp.broadcast_to(per_row, out_ref.shape)


def recvae_loss(recon_x, x, z, mu, logvar, post_mu, post_logvar, gamma,
                train_items=None, *, batch_tile=64, item_tile=2048):
    """RecVAE negative ELBO via a tiled Pallas TPU kernel.

    If `train_items` is None or is the same array object as `x` (the usual RecVAE
    usage), the per-row norm is computed inside the kernel from x so the big
    (B, N) array is only streamed once.
    """
    B, N = recon_x.shape
    D = z.shape[-1]
    use_x_norm = (train_items is None) or (train_items is x)

    # tile sizes: batch tile multiple of 8 (sublanes), item tile multiple of 128 (lanes).
    # Defaults keep per-step VMEM (2 big tiles x 2 pipeline buffers) ~4 MB, safe on
    # v5e/v6e/v7x; raise item_tile/batch_tile on v5e/v6e for larger tiles if desired.
    tb = min(int(batch_tile), _round_up(B, 8))
    tn = min(int(item_tile), _round_up(N, 128))
    b_pad = _round_up(B, tb)
    n_pad = _round_up(N, tn)

    f32 = jnp.float32
    recon_p = _pad2d(recon_x, b_pad, n_pad, _NEG_PAD)
    x_p = _pad2d(x, b_pad, n_pad, 0.0)
    z_p = _pad2d(z, b_pad, D, 0.0)
    mu_p = _pad2d(mu, b_pad, D, 0.0)
    logvar_p = _pad2d(logvar, b_pad, D, 0.0)
    pmu_p = _pad2d(post_mu, b_pad, D, 0.0)
    plv_p = _pad2d(post_logvar, b_pad, D, 0.0)

    gamma_arr = jnp.full((1, 1), gamma, dtype=f32)

    grid = (b_pad // tb, n_pad // tn)

    big_spec = pl.BlockSpec((tb, tn), lambda i, j: (i, j))
    lat_spec = pl.BlockSpec((tb, D), lambda i, j: (i, 0))
    vec_spec = pl.BlockSpec((tb, 1), lambda i, j: (i, 0))
    smem_spec = pl.BlockSpec(memory_space=pltpu.MemorySpace.SMEM)

    in_specs = [smem_spec, big_spec, big_spec]
    args = [gamma_arr, recon_p, x_p]
    if not use_x_norm:
        # train_items genuinely differs from x: pass only its tiny per-row sum.
        norm = jnp.sum(train_items.astype(f32), axis=-1, keepdims=True)
        args.append(_pad2d(norm, b_pad, 1, 0.0))
        in_specs.append(vec_spec)
    in_specs += [lat_spec] * 5
    args += [z_p, mu_p, logvar_p, pmu_p, plv_p]

    out_spec = pl.BlockSpec((tb, 128), lambda i, j: (i, 0))

    itemsize = jnp.dtype(recon_p.dtype).itemsize
    cost = pl.CostEstimate(
        flops=int(6 * b_pad * n_pad + 60 * b_pad * D),
        transcendentals=int(b_pad * n_pad + 6 * b_pad * D),
        bytes_accessed=int((recon_p.size + x_p.size) * itemsize
                           + 5 * b_pad * D * 4 + b_pad * 128 * 4),
    )

    out = pl.pallas_call(
        functools.partial(_recvae_kernel, use_x_norm),
        out_shape=jax.ShapeDtypeStruct((b_pad, 128), f32),
        grid_spec=pltpu.PrefetchScalarGridSpec(
            num_scalar_prefetch=0,
            grid=grid,
            in_specs=in_specs,
            out_specs=out_spec,
            scratch_shapes=[pltpu.VMEM((tb, 1), f32)] * 4,   # m, s, sum(recon*x), sum(x)
        ),
        compiler_params=pltpu.CompilerParams(
            dimension_semantics=("parallel", "arbitrary")),
        cost_estimate=cost,
    )(*args)

    # padded rows contribute exactly 0 by construction; reduce over the true batch.
    per_row = out[:B, 0]                         # mll_row - kl_weight * kld_row
    return -(jnp.sum(per_row) / B)


# ------------------------- plain-JAX reference -------------------------

def _log_norm_pdf_ref(x, mu, logvar):
    return -0.5 * (logvar + _LOG_2PI + (x - mu) ** 2 / jnp.exp(logvar))


def recvae_loss_ref(recon_x, x, z, mu, logvar, post_mu, post_logvar, gamma, train_items):
    norm = train_items.sum(axis=-1)
    kl_weight = gamma * norm
    log_sm = jax.nn.log_softmax(recon_x, axis=-1)
    mll = (log_sm * x).sum(axis=-1).mean()
    log_q = _log_norm_pdf_ref(z, mu, logvar)
    g = jnp.stack(
        [
            _log_norm_pdf_ref(z, 0.0, jnp.zeros_like(z)) + math.log(_MIX_W[0]),
            _log_norm_pdf_ref(z, post_mu, post_logvar) + math.log(_MIX_W[1]),
            _log_norm_pdf_ref(z, 0.0, jnp.full_like(z, _UNIF_LOGVAR)) + math.log(_MIX_W[2]),
        ],
        axis=-1,
    )
    log_prior = jax.scipy.special.logsumexp(g, axis=-1)
    kld = ((log_q - log_prior).sum(axis=-1) * kl_weight).mean()
    return -(mll - kld)


if __name__ == "__main__":
    B, N, D = 8, 256, 64   # batch, num items, latent dim
    gamma = 0.005
    ks = jax.random.split(jax.random.PRNGKey(0), 7)

    recon_x = jax.random.normal(ks[0], (B, N), dtype=jnp.float32)
    x = jax.random.bernoulli(ks[1], 0.1, (B, N)).astype(jnp.float32)
    z = jax.random.normal(ks[2], (B, D), dtype=jnp.float32)
    mu = jax.random.normal(ks[3], (B, D), dtype=jnp.float32) * 0.5
    logvar = jax.random.normal(ks[4], (B, D), dtype=jnp.float32) * 0.1
    # Deterministic stand-ins for the frozen old-encoder posterior parameters.
    post_mu = jax.random.normal(ks[5], (B, D), dtype=jnp.float32) * 0.5
    post_logvar = jax.random.normal(ks[6], (B, D), dtype=jnp.float32) * 0.1

    # 1) typical RecVAE usage: train_items IS x -> single-stream path, norm from x.
    loss = recvae_loss(recon_x, x, z, mu, logvar, post_mu, post_logvar, gamma,
                       train_items=x)
    loss = jax.block_until_ready(loss)
    ref = recvae_loss_ref(recon_x, x, z, mu, logvar, post_mu, post_logvar, gamma, x)
    assert jnp.allclose(loss, ref, rtol=2e-3, atol=2e-3), (loss, ref)

    # 2) distinct train_items + non-aligned shapes + multi-tile grid
    #    (exercises batch/item padding and the online logsumexp across item tiles).
    B2, N2 = 12, 300
    k = jax.random.split(jax.random.PRNGKey(1), 8)
    recon2 = jax.random.normal(k[0], (B2, N2), dtype=jnp.float32)
    x2 = jax.random.bernoulli(k[1], 0.1, (B2, N2)).astype(jnp.float32)
    z2 = jax.random.normal(k[2], (B2, D), dtype=jnp.float32)
    mu2 = jax.random.normal(k[3], (B2, D), dtype=jnp.float32) * 0.5
    logvar2 = jax.random.normal(k[4], (B2, D), dtype=jnp.float32) * 0.1
    pmu2 = jax.random.normal(k[5], (B2, D), dtype=jnp.float32) * 0.5
    plv2 = jax.random.normal(k[6], (B2, D), dtype=jnp.float32) * 0.1
    train2 = jax.random.bernoulli(k[7], 0.2, (B2, N2)).astype(jnp.float32)

    loss2 = recvae_loss(recon2, x2, z2, mu2, logvar2, pmu2, plv2, gamma,
                        train_items=train2, batch_tile=8, item_tile=128)
    loss2 = jax.block_until_ready(loss2)
    ref2 = recvae_loss_ref(recon2, x2, z2, mu2, logvar2, pmu2, plv2, gamma, train2)
    assert jnp.allclose(loss2, ref2, rtol=2e-3, atol=2e-3), (loss2, ref2)

    print("KERNEL_OK")
</pallas_src>

<mosaic_0001>
module attributes {stable_mosaic.version = 11 : i64} {
  func.func @_recvae_kernel(%arg0: i32, %arg1: i32, %arg2: memref<1x1xf32, #tpu.memory_space<smem>>, %arg3: memref<8x256xf32, #tpu.memory_space<vmem>>, %arg4: memref<8x256xf32, #tpu.memory_space<vmem>>, %arg5: memref<8x64xf32, #tpu.memory_space<vmem>>, %arg6: memref<8x64xf32, #tpu.memory_space<vmem>>, %arg7: memref<8x64xf32, #tpu.memory_space<vmem>>, %arg8: memref<8x64xf32, #tpu.memory_space<vmem>>, %arg9: memref<8x64xf32, #tpu.memory_space<vmem>>, %arg10: memref<8x128xf32, #tpu.memory_space<vmem>>, %arg11: memref<8x1xf32, #tpu.memory_space<vmem>>, %arg12: memref<8x1xf32, #tpu.memory_space<vmem>>, %arg13: memref<8x1xf32, #tpu.memory_space<vmem>>, %arg14: memref<8x1xf32, #tpu.memory_space<vmem>>) attributes {dimension_semantics = [#tpu.dimension_semantics<parallel>, #tpu.dimension_semantics<arbitrary>], iteration_bounds = array<i64: 1, 1>, scalar_prefetch = 0 : i64, scratch_operands = 4 : i64, tpu.core_type = #tpu.core_type<tc>, window_params = [{transform_indices = @transform_0, window_bounds = array<i64: 1, 1>}, {transform_indices = @transform_1, window_bounds = array<i64: 8, 256>}, {transform_indices = @transform_2, window_bounds = array<i64: 8, 256>}, {transform_indices = @transform_3, window_bounds = array<i64: 8, 64>}, {transform_indices = @transform_4, window_bounds = array<i64: 8, 64>}, {transform_indices = @transform_5, window_bounds = array<i64: 8, 64>}, {transform_indices = @transform_6, window_bounds = array<i64: 8, 64>}, {transform_indices = @transform_7, window_bounds = array<i64: 8, 64>}, {transform_indices = @transform_8, window_bounds = array<i64: 8, 128>}]} {
    %c0_i32 = arith.constant 0 : i32
    %0 = arith.cmpi eq, %arg1, %c0_i32 : i32
    %1 = arith.extui %0 : i1 to i32
    %c0_i32_0 = arith.constant 0 : i32
    %2 = arith.cmpi ne, %1, %c0_i32_0 : i32
    scf.if %2 {
      %cst_25 = arith.constant 0xFF800000 : f32
      %35 = vector.broadcast %cst_25 : f32 to vector<8x1xf32>
      %c0_26 = arith.constant 0 : index
      %c0_27 = arith.constant 0 : index
      %36 = vector.load %arg11[%c0_26, %c0_27] : memref<8x1xf32, #tpu.memory_space<vmem>>, vector<8x1xf32>
      tpu.vector_store %arg11[%c0_26, %c0_27], %35 {strides = array<i32>} : memref<8x1xf32, #tpu.memory_space<vmem>>, vector<8x1xf32>,
      %cst_28 = arith.constant 0.000000e+00 : f32
      %37 = vector.broadcast %cst_28 : f32 to vector<8x1xf32>
      %c0_29 = arith.constant 0 : index
      %c0_30 = arith.constant 0 : index
      %38 = vector.load %arg12[%c0_29, %c0_30] : memref<8x1xf32, #tpu.memory_space<vmem>>, vector<8x1xf32>
      tpu.vector_store %arg12[%c0_29, %c0_30], %37 {strides = array<i32>} : memref<8x1xf32, #tpu.memory_space<vmem>>, vector<8x1xf32>,
      %cst_31 = arith.constant 0.000000e+00 : f32
      %39 = vector.broadcast %cst_31 : f32 to vector<8x1xf32>
      %c0_32 = arith.constant 0 : index
      %c0_33 = arith.constant 0 : index
      %40 = vector.load %arg13[%c0_32, %c0_33] : memref<8x1xf32, #tpu.memory_space<vmem>>, vector<8x1xf32>
      tpu.vector_store %arg13[%c0_32, %c0_33], %39 {strides = array<i32>} : memref<8x1xf32, #tpu.memory_space<vmem>>, vector<8x1xf32>,
      %cst_34 = arith.constant 0.000000e+00 : f32
      %41 = vector.broadcast %cst_34 : f32 to vector<8x1xf32>
      %c0_35 = arith.constant 0 : index
      %c0_36 = arith.constant 0 : index
      %42 = vector.load %arg14[%c0_35, %c0_36] : memref<8x1xf32, #tpu.memory_space<vmem>>, vector<8x1xf32>
      tpu.vector_store %arg14[%c0_35, %c0_36], %41 {strides = array<i32>} : memref<8x1xf32, #tpu.memory_space<vmem>>, vector<8x1xf32>,
    } else {
    }
    %c0 = arith.constant 0 : index
    %c0_1 = arith.constant 0 : index
    %3 = vector.load %arg3[%c0, %c0_1] : memref<8x256xf32, #tpu.memory_space<vmem>>, vector<8x256xf32>
    %c0_2 = arith.constant 0 : index
    %c0_3 = arith.constant 0 : index
    %4 = vector.load %arg4[%c0_2, %c0_3] : memref<8x256xf32, #tpu.memory_space<vmem>>, vector<8x256xf32>
    %c0_4 = arith.constant 0 : index
    %c0_5 = arith.constant 0 : index
    %5 = vector.load %arg11[%c0_4, %c0_5] : memref<8x1xf32, #tpu.memory_space<vmem>>, vector<8x1xf32>
    %cst = arith.constant dense<0xFF800000> : vector<8xf32>
    %6 = vector.multi_reduction <maximumf>, %3, %cst [1] : vector<8x256xf32> to vector<8xf32>
    %7 = vector.shape_cast %6 : vector<8xf32> to vector<8x1xf32>
    %8 = arith.maximumf %5, %7 : vector<8x1xf32>
    %9 = arith.subf %5, %8 : vector<8x1xf32>
    %10 = math.exp %9 : vector<8x1xf32>
    %c0_6 = arith.constant 0 : index
    %c0_7 = arith.constant 0 : index
    %11 = vector.load %arg12[%c0_6, %c0_7] : memref<8x1xf32, #tpu.memory_space<vmem>>, vector<8x1xf32>
    %12 = arith.mulf %11, %10 : vector<8x1xf32>
    %13 = vector.broadcast %8 : vector<8x1xf32> to vector<8x256xf32>
    %14 = arith.subf %3, %13 : vector<8x256xf32>
    %15 = math.exp %14 : vector<8x256xf32>
    %cst_8 = arith.constant dense<0.000000e+00> : vector<8xf32>
    %16 = vector.multi_reduction <add>, %15, %cst_8 [1] : vector<8x256xf32> to vector<8xf32>
    %17 = vector.shape_cast %16 : vector<8xf32> to vector<8x1xf32>
    %18 = arith.addf %12, %17 : vector<8x1xf32>
    %c0_9 = arith.constant 0 : index
    %c0_10 = arith.constant 0 : index
    %19 = vector.load %arg12[%c0_9, %c0_10] : memref<8x1xf32, #tpu.memory_space<vmem>>, vector<8x1xf32>
    tpu.vector_store %arg12[%c0_9, %c0_10], %18 {strides = array<i32>} : memref<8x1xf32, #tpu.memory_space<vmem>>, vector<8x1xf32>,
    %c0_11 = arith.constant 0 : index
    %c0_12 = arith.constant 0 : index
    %20 = vector.load %arg11[%c0_11, %c0_12] : memref<8x1xf32, #tpu.memory_space<vmem>>, vector<8x1xf32>
    tpu.vector_store %arg11[%c0_11, %c0_12], %8 {strides = array<i32>} : memref<8x1xf32, #tpu.memory_space<vmem>>, vector<8x1xf32>,
    %c0_13 = arith.constant 0 : index
    %c0_14 = arith.constant 0 : index
    %21 = vector.load %arg13[%c0_13, %c0_14] : memref<8x1xf32, #tpu.memory_space<vmem>>, vector<8x1xf32>
    %22 = arith.mulf %3, %4 : vector<8x256xf32>
    %cst_15 = arith.constant dense<0.000000e+00> : vector<8xf32>
    %23 = vector.multi_reduction <add>, %22, %cst_15 [1] : vector<8x256xf32> to vector<8xf32>
    %24 = vector.shape_cast %23 : vector<8xf32> to vector<8x1xf32>
    %25 = arith.addf %21, %24 : vector<8x1xf32>
    %c0_16 = arith.constant 0 : index
    %c0_17 = arith.constant 0 : index
    %26 = vector.load %arg13[%c0_16, %c0_17] : memref<8x1xf32, #tpu.memory_space<vmem>>, vector<8x1xf32>
    tpu.vector_store %arg13[%c0_16, %c0_17], %25 {strides = array<i32>} : memref<8x1xf32, #tpu.memory_space<vmem>>, vector<8x1xf32>,
    %c0_18 = arith.constant 0 : index
    %c0_19 = arith.constant 0 : index
    %27 = vector.load %arg14[%c0_18, %c0_19] : memref<8x1xf32, #tpu.memory_space<vmem>>, vector<8x1xf32>
    %cst_20 = arith.constant dense<0.000000e+00> : vector<8xf32>
    %28 = vector.multi_reduction <add>, %4, %cst_20 [1] : vector<8x256xf32> to vector<8xf32>
    %29 = vector.shape_cast %28 : vector<8xf32> to vector<8x1xf32>
    %30 = arith.addf %27, %29 : vector<8x1xf32>
    %c0_21 = arith.constant 0 : index
    %c0_22 = arith.constant 0 : index
    %31 = vector.load %arg14[%c0_21, %c0_22] : memref<8x1xf32, #tpu.memory_space<vmem>>, vector<8x1xf32>
    tpu.vector_store %arg14[%c0_21, %c0_22], %30 {strides = array<i32>} : memref<8x1xf32, #tpu.memory_space<vmem>>, vector<8x1xf32>,
    %c0_i32_23 = arith.constant 0 : i32
    %32 = arith.cmpi eq, %arg1, %c0_i32_23 : i32
    %33 = arith.extui %32 : i1 to i32
    %c0_i32_24 = arith.constant 0 : i32
    %34 = arith.cmpi ne, %33, %c0_i32_24 : i32
    scf.if %34 {
      %c0_25 = arith.constant 0 : index
      %c0_26 = arith.constant 0 : index
      %35 = vector.load %arg11[%c0_25, %c0_26] : memref<8x1xf32, #tpu.memory_space<vmem>>, vector<8x1xf32>
      %c0_27 = arith.constant 0 : index
      %c0_28 = arith.constant 0 : index
      %36 = vector.load %arg12[%c0_27, %c0_28] : memref<8x1xf32, #tpu.memory_space<vmem>>, vector<8x1xf32>
      %37 = math.log %36 : vector<8x1xf32>
      %38 = arith.addf %35, %37 : vector<8x1xf32>
      %c0_29 = arith.constant 0 : index
      %c0_30 = arith.constant 0 : index
      %39 = vector.load %arg14[%c0_29, %c0_30] : memref<8x1xf32, #tpu.memory_space<vmem>>, vector<8x1xf32>
      %c0_31 = arith.constant 0 : index
      %c0_32 = arith.constant 0 : index
      %40 = vector.load %arg13[%c0_31, %c0_32] : memref<8x1xf32, #tpu.memory_space<vmem>>, vector<8x1xf32>
      %41 = arith.mulf %38, %39 : vector<8x1xf32>
      %42 = arith.subf %40, %41 : vector<8x1xf32>
      %c0_33 = arith.constant 0 : index
      %c0_34 = arith.constant 0 : index
      %43 = memref.load %arg2[%c0_33, %c0_34] : memref<1x1xf32, #tpu.memory_space<smem>>
      %44 = vector.broadcast %43 : f32 to vector<8x1xf32>
      %45 = arith.mulf %44, %39 : vector<8x1xf32>
      %c0_35 = arith.constant 0 : index
      %c0_36 = arith.constant 0 : index
      %46 = vector.load %arg5[%c0_35, %c0_36] : memref<8x64xf32, #tpu.memory_space<vmem>>, vector<8x64xf32>
      %c0_37 = arith.constant 0 : index
      %c0_38 = arith.constant 0 : index
      %47 = vector.load %arg6[%c0_37, %c0_38] : memref<8x64xf32, #tpu.memory_space<vmem>>, vector<8x64xf32>
      %c0_39 = arith.constant 0 : index
      %c0_40 = arith.constant 0 : index
      %48 = vector.load %arg7[%c0_39, %c0_40] : memref<8x64xf32, #tpu.memory_space<vmem>>, vector<8x64xf32>
      %c0_41 = arith.constant 0 : index
      %c0_42 = arith.constant 0 : index
      %49 = vector.load %arg8[%c0_41, %c0_42] : memref<8x64xf32, #tpu.memory_space<vmem>>, vector<8x64xf32>
      %c0_43 = arith.constant 0 : index
      %c0_44 = arith.constant 0 : index
      %50 = vector.load %arg9[%c0_43, %c0_44] : memref<8x64xf32, #tpu.memory_space<vmem>>, vector<8x64xf32>
      %cst_45 = arith.constant 1.83787704 : f32
      %51 = vector.broadcast %cst_45 : f32 to vector<8x64xf32>
      %52 = arith.addf %48, %51 : vector<8x64xf32>
      %53 = arith.subf %46, %47 : vector<8x64xf32>
      %54 = arith.mulf %53, %53 : vector<8x64xf32>
      %cst_46 = arith.constant 0.000000e+00 : f32
      %55 = vector.broadcast %cst_46 : f32 to vector<8x64xf32>
      %56 = arith.subf %55, %48 : vector<8x64xf32>
      %57 = math.exp %56 : vector<8x64xf32>
      %58 = arith.mulf %54, %57 : vector<8x64xf32>
      %59 = arith.addf %52, %58 : vector<8x64xf32>
      %cst_47 = arith.constant -5.000000e-01 : f32
      %60 = vector.broadcast %cst_47 : f32 to vector<8x64xf32>
      %61 = arith.mulf %60, %59 : vector<8x64xf32>
      %62 = arith.mulf %46, %46 : vector<8x64xf32>
      %cst_48 = arith.constant 1.83787704 : f32
      %63 = vector.broadcast %cst_48 : f32 to vector<8x64xf32>
      %64 = arith.addf %63, %62 : vector<8x64xf32>
      %cst_49 = arith.constant -5.000000e-01 : f32
      %65 = vector.broadcast %cst_49 : f32 to vector<8x64xf32>
      %66 = arith.mulf %65, %64 : vector<8x64xf32>
      %cst_50 = arith.constant -1.897120e+00 : f32
      %67 = vector.broadcast %cst_50 : f32 to vector<8x64xf32>
      %68 = arith.addf %66, %67 : vector<8x64xf32>
      %cst_51 = arith.constant 1.83787704 : f32
      %69 = vector.broadcast %cst_51 : f32 to vector<8x64xf32>
      %70 = arith.addf %50, %69 : vector<8x64xf32>
      %71 = arith.subf %46, %49 : vector<8x64xf32>
      %72 = arith.mulf %71, %71 : vector<8x64xf32>
      %cst_52 = arith.constant 0.000000e+00 : f32
      %73 = vector.broadcast %cst_52 : f32 to vector<8x64xf32>
      %74 = arith.subf %73, %50 : vector<8x64xf32>
      %75 = math.exp %74 : vector<8x64xf32>
      %76 = arith.mulf %72, %75 : vector<8x64xf32>
      %77 = arith.addf %70, %76 : vector<8x64xf32>
      %cst_53 = arith.constant -5.000000e-01 : f32
      %78 = vector.broadcast %cst_53 : f32 to vector<8x64xf32>
      %79 = arith.mulf %78, %77 : vector<8x64xf32>
      %cst_54 = arith.constant -0.287682086 : f32
      %80 = vector.broadcast %cst_54 : f32 to vector<8x64xf32>
      %81 = arith.addf %79, %80 : vector<8x64xf32>
      %cst_55 = arith.constant 4.5399931E-5 : f32
      %82 = vector.broadcast %cst_55 : f32 to vector<8x64xf32>
      %83 = arith.mulf %62, %82 : vector<8x64xf32>
      %cst_56 = arith.constant 11.8378773 : f32
      %84 = vector.broadcast %cst_56 : f32 to vector<8x64xf32>
      %85 = arith.addf %84, %83 : vector<8x64xf32>
      %cst_57 = arith.constant -5.000000e-01 : f32
      %86 = vector.broadcast %cst_57 : f32 to vector<8x64xf32>
      %87 = arith.mulf %86, %85 : vector<8x64xf32>
      %cst_58 = arith.constant -2.30258512 : f32
      %88 = vector.broadcast %cst_58 : f32 to vector<8x64xf32>
      %89 = arith.addf %87, %88 : vector<8x64xf32>
      %90 = arith.maximumf %68, %81 : vector<8x64xf32>
      %91 = arith.maximumf %90, %89 : vector<8x64xf32>
      %92 = arith.subf %68, %91 : vector<8x64xf32>
      %93 = math.exp %92 : vector<8x64xf32>
      %94 = arith.subf %81, %91 : vector<8x64xf32>
      %95 = math.exp %94 : vector<8x64xf32>
      %96 = arith.addf %93, %95 : vector<8x64xf32>
      %97 = arith.subf %89, %91 : vector<8x64xf32>
      %98 = math.exp %97 : vector<8x64xf32>
      %99 = arith.addf %96, %98 : vector<8x64xf32>
      %100 = math.log %99 : vector<8x64xf32>
      %101 = arith.addf %91, %100 : vector<8x64xf32>
      %102 = arith.subf %61, %101 : vector<8x64xf32>
      %cst_59 = arith.constant dense<0.000000e+00> : vector<8xf32>
      %103 = vector.multi_reduction <add>, %102, %cst_59 [1] : vector<8x64xf32> to vector<8xf32>
      %104 = vector.shape_cast %103 : vector<8xf32> to vector<8x1xf32>
      %105 = arith.mulf %45, %104 : vector<8x1xf32>
      %106 = arith.subf %42, %105 : vector<8x1xf32>
      %107 = vector.shape_cast %106 : vector<8x1xf32> to vector<8x1xf32>
      %108 = vector.broadcast %107 : vector<8x1xf32> to vector<8x128xf32>
      %c0_60 = arith.constant 0 : index
      %c0_61 = arith.constant 0 : index
      %109 = vector.load %arg10[%c0_60, %c0_61] : memref<8x128xf32, #tpu.memory_space<vmem>>, vector<8x128xf32>
      tpu.vector_store %arg10[%c0_60, %c0_61], %108 {strides = array<i32>} : memref<8x128xf32, #tpu.memory_space<vmem>>, vector<8x128xf32>,
    } else {
    }
    return
  }
  func.func @transform_0(%arg0: i32, %arg1: i32) -> (i32, i32) {
    %c0_i32 = arith.constant 0 : i32
    %c0_i32_0 = arith.constant 0 : i32
    %c0_i32_1 = arith.constant 0 : i32
    return %c0_i32, %c0_i32_0 : i32, i32
  }
  func.func @transform_1(%arg0: i32, %arg1: i32) -> (i32, i32) {
    %c0_i32 = arith.constant 0 : i32
    return %arg0, %arg1 : i32, i32
  }
  func.func @transform_2(%arg0: i32, %arg1: i32) -> (i32, i32) {
    %c0_i32 = arith.constant 0 : i32
    return %arg0, %arg1 : i32, i32
  }
  func.func @transform_3(%arg0: i32, %arg1: i32) -> (i32, i32) {
    %c0_i32 = arith.constant 0 : i32
    %c0_i32_0 = arith.constant 0 : i32
    return %arg0, %c0_i32 : i32, i32
  }
  func.func @transform_4(%arg0: i32, %arg1: i32) -> (i32, i32) {
    %c0_i32 = arith.constant 0 : i32
    %c0_i32_0 = arith.constant 0 : i32
    return %arg0, %c0_i32 : i32, i32
  }
  func.func @transform_5(%arg0: i32, %arg1: i32) -> (i32, i32) {
    %c0_i32 = arith.constant 0 : i32
    %c0_i32_0 = arith.constant 0 : i32
    return %arg0, %c0_i32 : i32, i32
  }
  func.func @transform_6(%arg0: i32, %arg1: i32) -> (i32, i32) {
    %c0_i32 = arith.constant 0 : i32
    %c0_i32_0 = arith.constant 0 : i32
    return %arg0, %c0_i32 : i32, i32
  }
  func.func @transform_7(%arg0: i32, %arg1: i32) -> (i32, i32) {
    %c0_i32 = arith.constant 0 : i32
    %c0_i32_0 = arith.constant 0 : i32
    return %arg0, %c0_i32 : i32, i32
  }
  func.func @transform_8(%arg0: i32, %arg1: i32) -> (i32, i32) {
    %c0_i32 = arith.constant 0 : i32
    %c0_i32_0 = arith.constant 0 : i32
    return %arg0, %c0_i32 : i32, i32
  }
}

</mosaic_0001>

<bundles_post_ra>
// kernel: tpu_custom_call.1
= control target key start
LH: loop header
LB: loop body
LE: loop exit
PB: predicated region body
PF: predicated region fallthrough
CT: control target
= control target key end

     0   :  { %14 = vsyncpa [#allocation8], 0  ;;  %s544_s0 = inlined_call_operand.<no memory space> [shape: f32[1,1], index: 0, kind: input, shape index: {}]   ;;  %s545_s1 = inlined_call_operand.hbm [shape: f32[8,256], index: 1, kind: input, shape index: {}]   ;;  %s546_s2 = inlined_call_operand.hbm [shape: f32[8,256], index: 2, kind: input, shape index: {}]   ;;  %s547_s3 = inlined_call_operand.hbm [shape: f32[8,64], index: 3, kind: input, shape index: {}]   ;;  %s548_s4 = inlined_call_operand.hbm [shape: f32[8,64], index: 4, kind: input, shape index: {}]   ;;  %s549_s5 = inlined_call_operand.vmem [shape: f32[8,64], index: 5, kind: input, shape index: {}]   ;;  %s550_s6 = inlined_call_operand.hbm [shape: f32[8,64], index: 6, kind: input, shape index: {}]   ;;  %s551_s7 = inlined_call_operand.hbm [shape: f32[8,64], index: 7, kind: input, shape index: {}]   ;;  %s552_s8 = inlined_call_operand.hbm [shape: f32[8,128], index: 8, kind: output, shape index: {}]  }
   0x1   :  { %15 = vsyncpa [#allocation11], 0 }
   0x2   :  { %16 = vsyncpa [#allocation14], 0 }
   0x3   :  { %17 = vsyncpa [#allocation17], 0 }
   0x4   :  { %18 = vsyncpa [#allocation9], 0  ;;  %s432_s27 = smov [#allocation10]   ;;  %s433_s29 = smov [#allocation13]  }
   0x5   :  { %s37_s28 = sshll.u32 %s432_s27, 4  ;;  %s57_s30 = sshll.u32 %s433_s29, 4  ;;  %s38_s28 = int_to_ptr.vmem [resolvable:$true] %s37_s28  ;;  %s58_s30 = int_to_ptr.vmem [resolvable:$true] %s57_s30 }
   0x6   :  { %s290_s9 = scalar_lea.vmem %s38_s28, 256  ;;  %p295_p1 = scmp.lt.s32.totalorder %s38_s28, %s38_s28 }
   0x7   :  { %p291_p0 = scmp.ne.s32.totalorder %s38_s28, %s290_s9  ;;  %p296_p2 = scmp.lt.s32.totalorder %s290_s9, %s290_s9 }
   0x9   :  { %p297_p3 = por %p296_p2, %p295_p1 }
   0xb   :  { %p298_p4 = pnand %p297_p3, %p291_p0 }
   0xd   :  { %301 = shalt.err (!%p298_p4)
}
   0xe   :  { %40 = dma.hbm_to_vmem [thread:$0]  %s546_s2, 256, %s38_s28, [#allocation11]  }
   0xf   :  { %s310_s12 = scalar_lea.vmem %s58_s30, 128  ;;  %p315_p6 = scmp.lt.s32.totalorder %s58_s30, %s58_s30 }
  0x10   :  { %p311_p5 = scmp.ne.s32.totalorder %s58_s30, %s310_s12  ;;  %p316_p7 = scmp.lt.s32.totalorder %s310_s12, %s310_s12 }
  0x12   :  { %p317_p8 = por %p316_p7, %p315_p6 }
  0x14   :  { %p318_p9 = pnand %p317_p8, %p311_p5 }
  0x16   :  { %321 = shalt.err (!%p318_p9)
}
  0x17   :  { %60 = dma.hbm_to_vmem [thread:$0]  %s548_s4, 128, %s58_s30, [#allocation14]  }
  0x18   :  { %s434_s15 = smov [#allocation7]   ;;  %s435_s17 = smov [#allocation12]  }
  0x19   :  { %s27_s16 = sshll.u32 %s434_s15, 4  ;;  %s47_s18 = sshll.u32 %s435_s17, 4  ;;  %s28_s16 = int_to_ptr.vmem [resolvable:$true] %s27_s16  ;;  %s48_s18 = int_to_ptr.vmem [resolvable:$true] %s47_s18 }
  0x1a   :  { %s330_s19 = scalar_lea.vmem %s28_s16, 256  ;;  %p335_p11 = scmp.lt.s32.totalorder %s28_s16, %s28_s16 }
  0x1b   :  { %p331_p10 = scmp.ne.s32.totalorder %s28_s16, %s330_s19  ;;  %p336_p12 = scmp.lt.s32.totalorder %s330_s19, %s330_s19 }
  0x1d   :  { %p337_p13 = por %p336_p12, %p335_p11 }
  0x1f   :  { %p338_p0 = pnand %p337_p13, %p331_p10 }
  0x21   :  { %341 = shalt.err (!%p338_p0)
}
  0x22   :  { %30 = dma.hbm_to_vmem [thread:$0]  %s545_s1, 256, %s28_s16, [#allocation8]  }
  0x23   :  { %s350_s21 = scalar_lea.vmem %s48_s18, 128  ;;  %p355_p2 = scmp.lt.s32.totalorder %s48_s18, %s48_s18 }
  0x24   :  { %p351_p1 = scmp.ne.s32.totalorder %s48_s18, %s350_s21  ;;  %p356_p3 = scmp.lt.s32.totalorder %s350_s21, %s350_s21 }
  0x26   :  { %p357_p4 = por %p356_p3, %p355_p2 }
  0x28   :  { %p358_p5 = pnand %p357_p4, %p351_p1 }
  0x2a   :  { %361 = shalt.err (!%p358_p5)
}
  0x2b   :  { %50 = dma.hbm_to_vmem [thread:$0]  %s547_s3, 128, %s48_s18, [#allocation11]  }
  0x2c   :  { %s436_s23 = smov [#allocation15]   ;;  %s437_s25 = smov [#allocation16]  }
  0x2d   :  { %s69_s24 = sshll.u32 %s436_s23, 4  ;;  %s79_s26 = sshll.u32 %s437_s25, 4  ;;  %s70_s24 = int_to_ptr.vmem [resolvable:$true] %s69_s24  ;;  %s80_s26 = int_to_ptr.vmem [resolvable:$true] %s79_s26 }
  0x2e   :  { %s370_s27 = scalar_lea.vmem %s70_s24, 128  ;;  %p375_p7 = scmp.lt.s32.totalorder %s70_s24, %s70_s24 }
  0x2f   :  { %p371_p6 = scmp.ne.s32.totalorder %s70_s24, %s370_s27  ;;  %p376_p8 = scmp.lt.s32.totalorder %s370_s27, %s370_s27 }
  0x31   :  { %p377_p9 = por %p376_p8, %p375_p7 }
  0x33   :  { %p378_p10 = pnand %p377_p9, %p371_p6 }
  0x35   :  { %381 = shalt.err (!%p378_p10)
}
  0x36   :  { %72 = dma.hbm_to_vmem [thread:$0]  %s550_s6, 128, %s70_s24, [#allocation14]  }
  0x37   :  { %s390_s29 = scalar_lea.vmem %s80_s26, 128  ;;  %p395_p12 = scmp.lt.s32.totalorder %s80_s26, %s80_s26 }
  0x38   :  { %p391_p11 = scmp.ne.s32.totalorder %s80_s26, %s390_s29  ;;  %p396_p13 = scmp.lt.s32.totalorder %s390_s29, %s390_s29 }
  0x3a   :  { %p397_p0 = por %p396_p13, %p395_p12 }
  0x3c   :  { %p398_p1 = pnand %p397_p0, %p391_p11 }
  0x3e   :  { %401 = shalt.err (!%p398_p1)
}
  0x3f   :  { %82 = dma.hbm_to_vmem [thread:$0]  %s551_s7, 128, %s80_s26, [#allocation17]  }
  0x40   :  { %422 = dma.done.wait [#allocation8], 256  }
  0x41   :  { %423 = vsyncadd [#allocation8], 4294967040 }
  0x42   :  { %424 = dma.done.wait [#allocation11], 384  }
  0x43   :  { %425 = vsyncadd [#allocation11], 4294966912 }
  0x44   :  { %426 = dma.done.wait [#allocation14], 256  }
  0x45   :  { %427 = vsyncadd [#allocation14], 4294967040 }
  0x46   :  { %428 = dma.done.wait [#allocation17], 128  }
  0x47   :  { %429 = vsyncadd [#allocation17], 4294967168  ;;  %vm105_vm0 = vcmask 7168   ;;  %v438_v0 = vmov -inf   ;;  %v506_v1 = vld [vmem:[#allocation7] sm:$0xff]  ;;  %v508_v2 = vld [vmem:[#allocation7 + $0x8] sm:$0xff] }
  0x48   :  { %106 = vst.msk [vmem:[#allocation2] sm:$0xff] %vm105_vm0, %v438_v0  ;;  %v115_v3 = vmax.f32 %v506_v1, %v508_v2  ;;  %v439_v4 = vmov 0   ;;  %v440_v5 = vmov 0.0   ;;  %v175_v10 = vld [vmem:[#allocation16] sm:$0xff]  ;;  %v171_v13 = vld [vmem:[#allocation12] sm:$0xff]  ;;  %v174_v14 = vld [vmem:[#allocation15] sm:$0xff] }
  0x49   :  { %260 = vset.pattern.permute.xlu0 %v439_v4  ;;  %261 = vset.pattern.permute.xlu1 %v439_v4  ;;  %107 = vst.msk [vmem:[#allocation3] sm:$0xff] %vm105_vm0, %v440_v5  ;;  %108 = vst.msk [vmem:[#allocation4] sm:$0xff] %vm105_vm0, %v440_v5  ;;  %v192_v11 = vsub.f32 0.0, %v175_v10  ;;  %v190_v15 = vsub.f32 %v171_v13, %v174_v14  ;;  %v185_v18 = vmul.f32 %v171_v13, %v171_v13  ;;  %v173_v39 = vld [vmem:[%s549_s5] sm:$0xff]  ;;  %v172_v52 = vld [vmem:[#allocation13] sm:$0xff]  ;;  %vm220_vm1 = vcmask 523264  }
  0x4a   :  { %116 = vmax.xlane.f32.xlu0 %v115_v3  ;;  %109 = vst.msk [vmem:[#allocation5] sm:$0xff] %vm105_vm0, %v440_v5  ;;  %v189_v19 = vadd.f32 1.837877, %v175_v10  ;;  %v179_v41 = vsub.f32 0.0, %v173_v39  ;;  %v177_v53 = vsub.f32 %v171_v13, %v172_v52  ;;  %v176_v56 = vadd.f32 1.837877, %v173_v39 }
  0x4b   :  { %v193_v12 = vmul.f32 1.442695, %v192_v11  ;;  %v191_v16 = vmul.f32 %v190_v15, %v190_v15  ;;  %v186_v21 = vadd.f32 1.837877, %v185_v18  ;;  %v199_v23 = vmul.f32 4.539993e-05, %v185_v18 }
  0x4c   :  { %v180_v43 = vmul.f32 1.442695, %v179_v41  ;;  %v178_v54 = vmul.f32 %v177_v53, %v177_v53  ;;  %v112_v61 = vld [vmem:[#allocation10] sm:$0xff]  ;;  %v113_v62 = vld [vmem:[#allocation10 + $0x8] sm:$0xff]  ;;  %s441_s10 = smov [#allocation18]  }
  0x4d   :  { %262 = vpow2.f32 %v193_v12  ;;  %v187_v24 = vmul.f32 -0.5, %v186_v21  ;;  %v200_v26 = vadd.f32 11.837877, %v199_v23  ;;  %v151_v4 = vadd.f32 %v113_v62, %v112_v61  ;;  %s238_s11 = sshll.u32 %s441_s10, 4  ;;  %s239_s11 = int_to_ptr.vmem [resolvable:$true] %s238_s11 }
  0x4e   :  { %v143_v5 = vmul.f32 %v112_v61, %v506_v1  ;;  %s402_s12 = scalar_lea.vmem %s239_s11, 128  ;;  %p407_p3 = scmp.lt.s32.totalorder %s239_s11, %s239_s11 }
  0x4f   :  { %v515_v6 = vld [vmem:[#allocation2] sm:$0xff]  ;;  %v188_v27 = vadd.f32 -1.89712, %v187_v24  ;;  %v201_v29 = vmul.f32 -0.5, %v200_v26  ;;  %p403_p2 = scmp.ne.s32.totalorder %s239_s11, %s402_s12  ;;  %p408_p4 = scmp.lt.s32.totalorder %s402_s12, %s402_s12 }
  0x51   :  { %v202_v30 = vadd.f32 -2.3025851, %v201_v29  ;;  %p409_p5 = por %p408_p4, %p407_p3 }
  0x53   :  { %p410_p6 = pnand %p409_p5, %p403_p2 }
  0x5a   :  { %v263_v17 = vpop.eup %262 }
  0x5b   :  { %v195_v20 = vmul.f32 %v263_v17, %v191_v16  ;;  %v122_v17 = vld [vmem:[#allocation3] sm:$0xff] }
  0x5d   :  { %v196_v22 = vadd.f32 %v195_v20, %v189_v19 }
  0x5f   :  { %v197_v25 = vmul.f32 -0.5, %v196_v22  ;;  %v142_v22 = vld [vmem:[#allocation4] sm:$0xff] }
  0x61   :  { %v198_v28 = vadd.f32 -0.2876821, %v197_v25 }
  0x63   :  { %v203_v31 = vmax.f32 %v188_v27, %v198_v28 }
  0x65   :  { %v204_v32 = vmax.f32 %v203_v31, %v202_v30 }
  0x67   :  { %v205_v33 = vsub.f32 %v188_v27, %v204_v32  ;;  %v208_v34 = vsub.f32 %v198_v28, %v204_v32  ;;  %v212_v37 = vsub.f32 %v202_v30, %v204_v32 }
  0x69   :  { %v206_v35 = vmul.f32 1.442695, %v205_v33  ;;  %v209_v36 = vmul.f32 1.442695, %v208_v34  ;;  %v213_v38 = vmul.f32 1.442695, %v212_v37 }
  0x6b   :  { %264 = vpow2.f32 %v206_v35 }
  0x6c   :  { %266 = vpow2.f32 %v209_v36 }
  0x6d   :  { %268 = vpow2.f32 %v213_v38 }
  0x6e   :  { %270 = vpow2.f32 %v180_v43 }
  0x78   :  { %v265_v40 = vpop.eup %264 }
  0x79   :  { %v267_v42 = vpop.eup %266 }
  0x7a   :  { %v211_v44 = vadd.f32 %v267_v42, %v265_v40  ;;  %v269_v45 = vpop.eup %268 }
  0x7b   :  { %v271_v55 = vpop.eup %270 }
  0x7c   :  { %v215_v46 = vadd.f32 %v269_v45, %v211_v44  ;;  %v182_v57 = vmul.f32 %v271_v55, %v178_v54 }
  0x7e   :  { %272 = vlog2.f32 %v215_v46  ;;  %v183_v63 = vadd.f32 %v182_v57, %v176_v56 }
  0x80   :  { %v184_v10 = vmul.f32 -0.5, %v183_v63 }
  0x8b   :  { %v273_v58 = vpop.eup %272 }
  0x8c   :  { %v217_v0 = vmul.f32 0.6931472, %v273_v58 }
  0x8e   :  { %v218_v11 = vadd.f32 %v217_v0, %v204_v32 }
  0x90   :  { %v219_v13 = vsub.f32 %v184_v10, %v218_v11 }
  0x92   :  { %v221_v14 = vsel %vm220_vm1, %v219_v13, 0.0 }
  0xd3   :  { %v117_v7 = vpop.xlane.xlu0 %116 }
  0xd4   :  { %v518_v8 = vmax.f32 %v515_v6, %v117_v7  ;;  %v144_v7 = vmul.f32 %v113_v62, %v508_v2 }
  0xd6   :  { %v119_v9 = vsub.f32 %v515_v6, %v518_v8  ;;  %141 = vst.msk [vmem:[#allocation2] sm:$0xff] %vm105_vm0, %v518_v8  ;;  %126 = vperm.xlu0 %260, %v518_v8   ;;  %v145_v12 = vadd.f32 %v144_v7, %v143_v5 }
  0xd8   :  { %v120_v15 = vmul.f32 1.442695, %v119_v9  ;;  %v169_v9 = vstv %s544_s0 }
  0xdd   :  { %v159_v27 = vld [vmem:[#allocation2] sm:$0xff] }
 0x151   :  { %v127_v47 = vpop.permute.xlu0 %126 }
 0x152   :  { %v129_v48 = vsub.f32 %v506_v1, %v127_v47  ;;  %v130_v49 = vsub.f32 %v508_v2, %v127_v47  ;;  %v150_v2 = vld [vmem:[#allocation5] sm:$0xff] }
 0x154   :  { %v131_v50 = vmul.f32 1.442695, %v129_v48  ;;  %v133_v51 = vmul.f32 1.442695, %v130_v49 }
 0x156   :  { %274 = vpow2.f32 %v131_v50 }
 0x157   :  { %276 = vpow2.f32 %v133_v51 }
 0x158   :  { %278 = vpow2.f32 %v120_v15 }
 0x163   :  { %v275_v59 = vpop.eup %274 }
 0x164   :  { %v277_v60 = vpop.eup %276 }
 0x165   :  { %v135_v3 = vadd.f32 %v277_v60, %v275_v59  ;;  %v279_v16 = vpop.eup %278 }
 0x166   :  { %v123_v18 = vmul.f32 %v279_v16, %v122_v17 }
 0x167   :  { %136 = vadd.xlane.f32.xlu1 %v135_v3 }
 0x16b   :  { %152 = vadd.xlane.f32.xlu1 %v151_v4 }
 0x16f   :  { %146 = vadd.xlane.f32.xlu1 %v145_v12 }
 0x173   :  { %222 = vadd.xlane.f32.xlu1 %v221_v14 }
 0x1f0   :  { %v137_v1 = vpop.xlane.xlu1 %136 }
 0x1f1   :  { %v138_v19 = vadd.f32 %v137_v1, %v123_v18 }
 0x1f3   :  { %140 = vst.msk [vmem:[#allocation3] sm:$0xff] %vm105_vm0, %v138_v19 }
 0x1f4   :  { %v153_v20 = vpop.xlane.xlu1 %152 }
 0x1f5   :  { %v154_v21 = vadd.f32 %v153_v20, %v150_v2 }
 0x1f7   :  { %155 = vst.msk [vmem:[#allocation5] sm:$0xff] %vm105_vm0, %v154_v21 }
 0x1f8   :  { %v147_v23 = vpop.xlane.xlu1 %146 }
 0x1f9   :  { %v148_v24 = vadd.f32 %v147_v23, %v142_v22 }
 0x1fa   :  { %v160_v25 = vld [vmem:[#allocation3] sm:$0xff] }
 0x1fb   :  { %149 = vst.msk [vmem:[#allocation4] sm:$0xff] %vm105_vm0, %v148_v24  ;;  %280 = vlog2.f32 %v160_v25 }
 0x1fc   :  { %v223_v31 = vpop.xlane.xlu1 %222 }
 0x1fe   :  { %v164_v8 = vld [vmem:[#allocation5] sm:$0xff] }
 0x1ff   :  { %v170_v28 = vmul.f32 %v169_v9, %v164_v8 }
 0x201   :  { %v224_v34 = vmul.f32 %v223_v31, %v170_v28 }
 0x202   :  { %v165_v30 = vld [vmem:[#allocation4] sm:$0xff] }
 0x208   :  { %v281_v6 = vpop.eup %280 }
 0x209   :  { %v162_v26 = vmul.f32 0.6931472, %v281_v6 }
 0x20b   :  { %v163_v29 = vadd.f32 %v162_v26, %v159_v27 }
 0x20d   :  { %v166_v32 = vmul.f32 %v164_v8, %v163_v29 }
 0x20f   :  { %v167_v33 = vsub.f32 %v165_v30, %v166_v32 }
 0x211   :  { %v225_v35 = vsub.f32 %v167_v33, %v224_v34 }
 0x213   :  { %228 = vperm.xlu1 %261, %v225_v35  }
 0x28e   :  { %v229_v36 = vpop.permute.xlu1 %228 }
 0x28f   :  { %231 = vst [vmem:[#allocation18] sm:$0xff] %v229_v36 }
 0x290   :  { %413 = shalt.err (!%p410_p6)
}
 0x291   :  { %241 = dma.vmem_to_hbm [thread:$0]  %s239_s11, 128, %s552_s8, [#allocation9]  }
 0x292   :  { %430 = dma.done.wait [#allocation9], 128  }
 0x293   :  { %431 = vsyncadd [#allocation9], 4294967168 }
 0x294   :  { %245 = vsyncpa [#allocation8], 1 }
 0x295   :  { %246 = vsyncpa [#allocation11], 1 }
 0x296   :  { %247 = vsyncpa [#allocation14], 1 }
 0x297   :  { %248 = vsyncpa [#allocation17], 1 }
 0x298   :  { %249 = vsyncpa [#allocation9], 1 }

</bundles_post_ra>
